<compile_context>
chip_gen: v5e
topology: v5e:2x2
jax: 0.10.0
libtpu: 0.0.40
codegen_flags: <defaults>
</compile_context>

<pallas_src>
import functools

import jax
import jax.numpy as jnp
from jax.experimental import pallas as pl
from jax.experimental.pallas import tpu as pltpu


LANE = 128  # TPU lane width; hidden / output widths are padded to this.


def _round_up(x, m):
    return ((x + m - 1) // m) * m


def _swish(v):
    # v * sigmoid(v) with the divide on the EUP slot (approx reciprocal).
    return v * pl.reciprocal(1.0 + jnp.exp(-v), approx=True)


def resnet_kernel(
    x_ref,                      # (TILE_B, in_features)
    wx_ref,                     # (in_features, 3*Hp)  fused [W11 | W21x | Wabx]
    w12_ref, w21h_ref, w22_ref, wabh_ref, wout_ref,
    b11_ref, b12_ref, b21_ref, b22_ref, bab_ref, bout_ref,
    o_ref,                      # (TILE_B, OUTp)
):
    x = x_ref[...].astype(jnp.float32)
    Hp = w12_ref.shape[0]

    # Single fused tiny-K matmul for every consumer of x.
    xw = jnp.dot(x, wx_ref[...], preferred_element_type=jnp.float32)
    xw11 = xw[:, 0 * Hp:1 * Hp]
    xw21 = xw[:, 1 * Hp:2 * Hp]
    xwab = xw[:, 2 * Hp:3 * Hp]

    # block1
    h = _swish(xw11 + b11_ref[...])
    h = _swish(jnp.dot(h, w12_ref[...], preferred_element_type=jnp.float32) + b12_ref[...])

    # block2 on cat([h, x]) -> split weights (h-part matmul + precomputed x-part)
    h = _swish(jnp.dot(h, w21h_ref[...], preferred_element_type=jnp.float32) + xw21 + b21_ref[...])
    h = _swish(jnp.dot(h, w22_ref[...], preferred_element_type=jnp.float32) + b22_ref[...])

    # layer_after_block on cat([h, x]) -> split weights
    h = _swish(jnp.dot(h, wabh_ref[...], preferred_element_type=jnp.float32) + xwab + bab_ref[...])

    # output layer (no activation); lane-dense 128-wide store.
    o_ref[...] = (
        jnp.dot(h, wout_ref[...], preferred_element_type=jnp.float32) + bout_ref[...]
    ).astype(o_ref.dtype)


def make_params(key, in_features, out_features, num_neurons, dtype=jnp.float32):
    """Deterministic PyTorch-like init: U(-1/sqrt(fan_in), 1/sqrt(fan_in)).

    Weights are stored transposed: (in_dim, out_dim) so y = x @ W + b.
    """
    def linear(key, fan_in, fan_out):
        kw, kb = jax.random.split(key)
        bound = 1.0 / jnp.sqrt(jnp.asarray(fan_in, jnp.float32))
        w = jax.random.uniform(kw, (fan_in, fan_out), dtype, -bound, bound)
        b = jax.random.uniform(kb, (1, fan_out), dtype, -bound, bound)
        return w, b

    ks = jax.random.split(key, 6)
    p = {}
    p["w11"], p["b11"] = linear(ks[0], in_features, num_neurons)
    p["w12"], p["b12"] = linear(ks[1], num_neurons, num_neurons)
    w21, p["b21"] = linear(ks[2], in_features + num_neurons, num_neurons)
    # cat order is [h, x]: first num_neurons rows belong to h, the rest to x.
    p["w21h"], p["w21x"] = w21[:num_neurons], w21[num_neurons:]
    p["w22"], p["b22"] = linear(ks[3], num_neurons, num_neurons)
    wab, p["bab"] = linear(ks[4], num_neurons + in_features, num_neurons)
    p["wabh"], p["wabx"] = wab[:num_neurons], wab[num_neurons:]
    p["wout"], p["bout"] = linear(ks[5], num_neurons, out_features)
    return p


def _pad2(a, rows, cols):
    out = jnp.zeros((rows, cols), a.dtype)
    return out.at[: a.shape[0], : a.shape[1]].set(a)


def pack_params(params):
    """Zero-pad to lane-dense (128-wide) operands and fuse the x-side weights."""
    in_features = params["w11"].shape[0]
    H = params["w11"].shape[1]
    OUT = params["wout"].shape[1]
    Hp = _round_up(H, LANE)
    OUTp = _round_up(OUT, LANE)

    packed = {
        "wx": jnp.concatenate(
            [
                _pad2(params["w11"], in_features, Hp),
                _pad2(params["w21x"], in_features, Hp),
                _pad2(params["wabx"], in_features, Hp),
            ],
            axis=1,
        ),  # (in_features, 3*Hp)
        "w12": _pad2(params["w12"], Hp, Hp),
        "w21h": _pad2(params["w21h"], Hp, Hp),
        "w22": _pad2(params["w22"], Hp, Hp),
        "wabh": _pad2(params["wabh"], Hp, Hp),
        "wout": _pad2(params["wout"], Hp, OUTp),
        "b11": _pad2(params["b11"], 1, Hp),
        "b12": _pad2(params["b12"], 1, Hp),
        "b21": _pad2(params["b21"], 1, Hp),
        "b22": _pad2(params["b22"], 1, Hp),
        "bab": _pad2(params["bab"], 1, Hp),
        "bout": _pad2(params["bout"], 1, OUTp),
    }
    return packed, Hp, OUTp


@functools.partial(jax.jit, static_argnames=("tile_b",))
def resnet_forward(x, params, *, tile_b=512):
    B, in_features = x.shape
    out_features = params["wout"].shape[1]

    packed, Hp, OUTp = pack_params(params)

    # Batch tiling: large tiles amortize per-step overhead; small batches use
    # a single (padded-to-8) tile.
    TILE_B = min(tile_b, _round_up(B, 8))
    B_pad = _round_up(B, TILE_B)
    if B_pad != B:
        x = jnp.pad(x, ((0, B_pad - B), (0, 0)))
    num_tiles = B_pad // TILE_B

    args = [
        x,
        packed["wx"],
        packed["w12"], packed["w21h"], packed["w22"], packed["wabh"], packed["wout"],
        packed["b11"], packed["b12"], packed["b21"], packed["b22"], packed["bab"],
        packed["bout"],
    ]

    const_map = lambda i: (0, 0)  # weights/biases: same block every grid step
    in_specs = [pl.BlockSpec((TILE_B, in_features), lambda i: (i, 0))] + [
        pl.BlockSpec(a.shape, const_map) for a in args[1:]
    ]
    out_spec = pl.BlockSpec((TILE_B, OUTp), lambda i: (i, 0))

    weight_bytes = sum(int(a.size) * a.dtype.itemsize for a in args[1:])
    cost = pl.CostEstimate(
        flops=2 * B_pad * (in_features * 3 * Hp + 4 * Hp * Hp + Hp * OUTp),
        transcendentals=5 * B_pad * Hp,
        bytes_accessed=B_pad * (in_features + OUTp) * x.dtype.itemsize + weight_bytes,
    )

    out_padded = pl.pallas_call(
        resnet_kernel,
        out_shape=jax.ShapeDtypeStruct((B_pad, OUTp), x.dtype),
        grid=(num_tiles,),
        in_specs=in_specs,
        out_specs=out_spec,
        compiler_params=pltpu.CompilerParams(
            dimension_semantics=("parallel",),
            vmem_limit_bytes=32 * 1024 * 1024,
        ),
        cost_estimate=cost,
    )(*args)

    return out_padded[:B, :out_features]


def resnet_reference(x, params):
    """Pure-JAX reference mirroring the PyTorch forward (unpadded)."""
    def swish(v):
        return v * jax.nn.sigmoid(v)

    h = swish(x @ params["w11"] + params["b11"])
    h = swish(h @ params["w12"] + params["b12"])
    h = swish(h @ params["w21h"] + x @ params["w21x"] + params["b21"])
    h = swish(h @ params["w22"] + params["b22"])
    h = swish(h @ params["wabh"] + x @ params["wabx"] + params["bab"])
    return h @ params["wout"] + params["bout"]


if __name__ == "__main__":
    in_features, out_features, num_neurons = 4, 3, 32
    batch = 8

    key = jax.random.PRNGKey(0)
    kx, kp = jax.random.split(key)
    x = jax.random.normal(kx, (batch, in_features), jnp.float32)
    params = make_params(kp, in_features, out_features, num_neurons)

    out = jax.block_until_ready(resnet_forward(x, params))
    ref = resnet_reference(x, params)

    assert out.shape == (batch, out_features)
    # approx reciprocal in swish -> slightly looser tolerance than exact sigmoid.
    assert jnp.allclose(out, ref, atol=5e-3, rtol=5e-3), (
        float(jnp.max(jnp.abs(out - ref)))
    )
    print("KERNEL_OK")
</pallas_src>

<mosaic_0001>
module attributes {stable_mosaic.version = 11 : i64} {
  func.func @resnet_kernel(%arg0: i32, %arg1: memref<8x4xf32, #tpu.memory_space<vmem>>, %arg2: memref<4x384xf32, #tpu.memory_space<vmem>>, %arg3: memref<128x128xf32, #tpu.memory_space<vmem>>, %arg4: memref<128x128xf32, #tpu.memory_space<vmem>>, %arg5: memref<128x128xf32, #tpu.memory_space<vmem>>, %arg6: memref<128x128xf32, #tpu.memory_space<vmem>>, %arg7: memref<128x128xf32, #tpu.memory_space<vmem>>, %arg8: memref<1x128xf32, #tpu.memory_space<vmem>>, %arg9: memref<1x128xf32, #tpu.memory_space<vmem>>, %arg10: memref<1x128xf32, #tpu.memory_space<vmem>>, %arg11: memref<1x128xf32, #tpu.memory_space<vmem>>, %arg12: memref<1x128xf32, #tpu.memory_space<vmem>>, %arg13: memref<1x128xf32, #tpu.memory_space<vmem>>, %arg14: memref<8x128xf32, #tpu.memory_space<vmem>>) attributes {dimension_semantics = [#tpu.dimension_semantics<parallel>], iteration_bounds = array<i64: 1>, scalar_prefetch = 0 : i64, scratch_operands = 0 : i64, tpu.core_type = #tpu.core_type<tc>, window_params = [{transform_indices = @transform_0, window_bounds = array<i64: 8, 4>}, {pipeline_mode = #tpu.pipeline_mode<synchronous>, transform_indices = @transform_1, window_bounds = array<i64: 4, 384>}, {pipeline_mode = #tpu.pipeline_mode<synchronous>, transform_indices = @transform_2, window_bounds = array<i64: 128, 128>}, {pipeline_mode = #tpu.pipeline_mode<synchronous>, transform_indices = @transform_3, window_bounds = array<i64: 128, 128>}, {pipeline_mode = #tpu.pipeline_mode<synchronous>, transform_indices = @transform_4, window_bounds = array<i64: 128, 128>}, {pipeline_mode = #tpu.pipeline_mode<synchronous>, transform_indices = @transform_5, window_bounds = array<i64: 128, 128>}, {pipeline_mode = #tpu.pipeline_mode<synchronous>, transform_indices = @transform_6, window_bounds = array<i64: 128, 128>}, {pipeline_mode = #tpu.pipeline_mode<synchronous>, transform_indices = @transform_7, window_bounds = array<i64: 1, 128>}, {pipeline_mode = #tpu.pipeline_mode<synchronous>, transform_indices = @transform_8, window_bounds = array<i64: 1, 128>}, {pipeline_mode = #tpu.pipeline_mode<synchronous>, transform_indices = @transform_9, window_bounds = array<i64: 1, 128>}, {pipeline_mode = #tpu.pipeline_mode<synchronous>, transform_indices = @transform_10, window_bounds = array<i64: 1, 128>}, {pipeline_mode = #tpu.pipeline_mode<synchronous>, transform_indices = @transform_11, window_bounds = array<i64: 1, 128>}, {pipeline_mode = #tpu.pipeline_mode<synchronous>, transform_indices = @transform_12, window_bounds = array<i64: 1, 128>}, {transform_indices = @transform_13, window_bounds = array<i64: 8, 128>}]} {
    %c0 = arith.constant 0 : index
    %c0_0 = arith.constant 0 : index
    %0 = vector.load %arg1[%c0, %c0_0] : memref<8x4xf32, #tpu.memory_space<vmem>>, vector<8x4xf32>
    %c0_1 = arith.constant 0 : index
    %c0_2 = arith.constant 0 : index
    %1 = vector.load %arg2[%c0_1, %c0_2] : memref<4x384xf32, #tpu.memory_space<vmem>>, vector<4x384xf32>
    %cst = arith.constant dense<0.000000e+00> : vector<8x384xf32>
    %2 = tpu.matmul %0, %1, %cst {dimension_numbers = #tpu.dot_dimension_numbers<[1], [0], [0], [1], [0, 0, 1, 1], [], []>} : vector<8x4xf32>, vector<4x384xf32>, vector<8x384xf32> -> vector<8x384xf32>
    %3 = vector.extract_strided_slice %2 {offsets = [0, 0], sizes = [8, 128], strides = [1, 1]} : vector<8x384xf32> to vector<8x128xf32>
    %4 = vector.extract_strided_slice %2 {offsets = [0, 128], sizes = [8, 128], strides = [1, 1]} : vector<8x384xf32> to vector<8x128xf32>
    %5 = vector.extract_strided_slice %2 {offsets = [0, 256], sizes = [8, 128], strides = [1, 1]} : vector<8x384xf32> to vector<8x128xf32>
    %c0_3 = arith.constant 0 : index
    %c0_4 = arith.constant 0 : index
    %6 = vector.load %arg8[%c0_3, %c0_4] : memref<1x128xf32, #tpu.memory_space<vmem>>, vector<1x128xf32>
    %7 = vector.broadcast %6 : vector<1x128xf32> to vector<8x128xf32>
    %8 = arith.addf %3, %7 : vector<8x128xf32>
    %cst_5 = arith.constant 0.000000e+00 : f32
    %9 = vector.broadcast %cst_5 : f32 to vector<8x128xf32>
    %10 = arith.subf %9, %8 : vector<8x128xf32>
    %11 = math.exp %10 : vector<8x128xf32>
    %cst_6 = arith.constant 1.000000e+00 : f32
    %12 = vector.broadcast %cst_6 : f32 to vector<8x128xf32>
    %13 = arith.addf %12, %11 : vector<8x128xf32>
    %14 = tpu.reciprocal %13 {approx = true} : vector<8x128xf32> -> vector<8x128xf32>
    %15 = arith.mulf %8, %14 : vector<8x128xf32>
    %c0_7 = arith.constant 0 : index
    %c0_8 = arith.constant 0 : index
    %16 = vector.load %arg3[%c0_7, %c0_8] : memref<128x128xf32, #tpu.memory_space<vmem>>, vector<128x128xf32>
    %cst_9 = arith.constant dense<0.000000e+00> : vector<8x128xf32>
    %17 = tpu.matmul %15, %16, %cst_9 {dimension_numbers = #tpu.dot_dimension_numbers<[1], [0], [0], [1], [0, 0, 1, 1], [], []>} : vector<8x128xf32>, vector<128x128xf32>, vector<8x128xf32> -> vector<8x128xf32>
    %c0_10 = arith.constant 0 : index
    %c0_11 = arith.constant 0 : index
    %18 = vector.load %arg9[%c0_10, %c0_11] : memref<1x128xf32, #tpu.memory_space<vmem>>, vector<1x128xf32>
    %19 = vector.broadcast %18 : vector<1x128xf32> to vector<8x128xf32>
    %20 = arith.addf %17, %19 : vector<8x128xf32>
    %cst_12 = arith.constant 0.000000e+00 : f32
    %21 = vector.broadcast %cst_12 : f32 to vector<8x128xf32>
    %22 = arith.subf %21, %20 : vector<8x128xf32>
    %23 = math.exp %22 : vector<8x128xf32>
    %cst_13 = arith.constant 1.000000e+00 : f32
    %24 = vector.broadcast %cst_13 : f32 to vector<8x128xf32>
    %25 = arith.addf %24, %23 : vector<8x128xf32>
    %26 = tpu.reciprocal %25 {approx = true} : vector<8x128xf32> -> vector<8x128xf32>
    %27 = arith.mulf %20, %26 : vector<8x128xf32>
    %c0_14 = arith.constant 0 : index
    %c0_15 = arith.constant 0 : index
    %28 = vector.load %arg4[%c0_14, %c0_15] : memref<128x128xf32, #tpu.memory_space<vmem>>, vector<128x128xf32>
    %cst_16 = arith.constant dense<0.000000e+00> : vector<8x128xf32>
    %29 = tpu.matmul %27, %28, %cst_16 {dimension_numbers = #tpu.dot_dimension_numbers<[1], [0], [0], [1], [0, 0, 1, 1], [], []>} : vector<8x128xf32>, vector<128x128xf32>, vector<8x128xf32> -> vector<8x128xf32>
    %30 = arith.addf %29, %4 : vector<8x128xf32>
    %c0_17 = arith.constant 0 : index
    %c0_18 = arith.constant 0 : index
    %31 = vector.load %arg10[%c0_17, %c0_18] : memref<1x128xf32, #tpu.memory_space<vmem>>, vector<1x128xf32>
    %32 = vector.broadcast %31 : vector<1x128xf32> to vector<8x128xf32>
    %33 = arith.addf %30, %32 : vector<8x128xf32>
    %cst_19 = arith.constant 0.000000e+00 : f32
    %34 = vector.broadcast %cst_19 : f32 to vector<8x128xf32>
    %35 = arith.subf %34, %33 : vector<8x128xf32>
    %36 = math.exp %35 : vector<8x128xf32>
    %cst_20 = arith.constant 1.000000e+00 : f32
    %37 = vector.broadcast %cst_20 : f32 to vector<8x128xf32>
    %38 = arith.addf %37, %36 : vector<8x128xf32>
    %39 = tpu.reciprocal %38 {approx = true} : vector<8x128xf32> -> vector<8x128xf32>
    %40 = arith.mulf %33, %39 : vector<8x128xf32>
    %c0_21 = arith.constant 0 : index
    %c0_22 = arith.constant 0 : index
    %41 = vector.load %arg5[%c0_21, %c0_22] : memref<128x128xf32, #tpu.memory_space<vmem>>, vector<128x128xf32>
    %cst_23 = arith.constant dense<0.000000e+00> : vector<8x128xf32>
    %42 = tpu.matmul %40, %41, %cst_23 {dimension_numbers = #tpu.dot_dimension_numbers<[1], [0], [0], [1], [0, 0, 1, 1], [], []>} : vector<8x128xf32>, vector<128x128xf32>, vector<8x128xf32> -> vector<8x128xf32>
    %c0_24 = arith.constant 0 : index
    %c0_25 = arith.constant 0 : index
    %43 = vector.load %arg11[%c0_24, %c0_25] : memref<1x128xf32, #tpu.memory_space<vmem>>, vector<1x128xf32>
    %44 = vector.broadcast %43 : vector<1x128xf32> to vector<8x128xf32>
    %45 = arith.addf %42, %44 : vector<8x128xf32>
    %cst_26 = arith.constant 0.000000e+00 : f32
    %46 = vector.broadcast %cst_26 : f32 to vector<8x128xf32>
    %47 = arith.subf %46, %45 : vector<8x128xf32>
    %48 = math.exp %47 : vector<8x128xf32>
    %cst_27 = arith.constant 1.000000e+00 : f32
    %49 = vector.broadcast %cst_27 : f32 to vector<8x128xf32>
    %50 = arith.addf %49, %48 : vector<8x128xf32>
    %51 = tpu.reciprocal %50 {approx = true} : vector<8x128xf32> -> vector<8x128xf32>
    %52 = arith.mulf %45, %51 : vector<8x128xf32>
    %c0_28 = arith.constant 0 : index
    %c0_29 = arith.constant 0 : index
    %53 = vector.load %arg6[%c0_28, %c0_29] : memref<128x128xf32, #tpu.memory_space<vmem>>, vector<128x128xf32>
    %cst_30 = arith.constant dense<0.000000e+00> : vector<8x128xf32>
    %54 = tpu.matmul %52, %53, %cst_30 {dimension_numbers = #tpu.dot_dimension_numbers<[1], [0], [0], [1], [0, 0, 1, 1], [], []>} : vector<8x128xf32>, vector<128x128xf32>, vector<8x128xf32> -> vector<8x128xf32>
    %55 = arith.addf %54, %5 : vector<8x128xf32>
    %c0_31 = arith.constant 0 : index
    %c0_32 = arith.constant 0 : index
    %56 = vector.load %arg12[%c0_31, %c0_32] : memref<1x128xf32, #tpu.memory_space<vmem>>, vector<1x128xf32>
    %57 = vector.broadcast %56 : vector<1x128xf32> to vector<8x128xf32>
    %58 = arith.addf %55, %57 : vector<8x128xf32>
    %cst_33 = arith.constant 0.000000e+00 : f32
    %59 = vector.broadcast %cst_33 : f32 to vector<8x128xf32>
    %60 = arith.subf %59, %58 : vector<8x128xf32>
    %61 = math.exp %60 : vector<8x128xf32>
    %cst_34 = arith.constant 1.000000e+00 : f32
    %62 = vector.broadcast %cst_34 : f32 to vector<8x128xf32>
    %63 = arith.addf %62, %61 : vector<8x128xf32>
    %64 = tpu.reciprocal %63 {approx = true} : vector<8x128xf32> -> vector<8x128xf32>
    %65 = arith.mulf %58, %64 : vector<8x128xf32>
    %c0_35 = arith.constant 0 : index
    %c0_36 = arith.constant 0 : index
    %66 = vector.load %arg7[%c0_35, %c0_36] : memref<128x128xf32, #tpu.memory_space<vmem>>, vector<128x128xf32>
    %cst_37 = arith.constant dense<0.000000e+00> : vector<8x128xf32>
    %67 = tpu.matmul %65, %66, %cst_37 {dimension_numbers = #tpu.dot_dimension_numbers<[1], [0], [0], [1], [0, 0, 1, 1], [], []>} : vector<8x128xf32>, vector<128x128xf32>, vector<8x128xf32> -> vector<8x128xf32>
    %c0_38 = arith.constant 0 : index
    %c0_39 = arith.constant 0 : index
    %68 = vector.load %arg13[%c0_38, %c0_39] : memref<1x128xf32, #tpu.memory_space<vmem>>, vector<1x128xf32>
    %69 = vector.broadcast %68 : vector<1x128xf32> to vector<8x128xf32>
    %70 = arith.addf %67, %69 : vector<8x128xf32>
    %c0_40 = arith.constant 0 : index
    %c0_41 = arith.constant 0 : index
    %71 = vector.load %arg14[%c0_40, %c0_41] : memref<8x128xf32, #tpu.memory_space<vmem>>, vector<8x128xf32>
    tpu.vector_store %arg14[%c0_40, %c0_41], %70 {strides = array<i32>} : memref<8x128xf32, #tpu.memory_space<vmem>>, vector<8x128xf32>,
    return
  }
  func.func @transform_0(%arg0: i32) -> (i32, i32) {
    %c0_i32 = arith.constant 0 : i32
    %c0_i32_0 = arith.constant 0 : i32
    return %arg0, %c0_i32 : i32, i32
  }
  func.func @transform_1(%arg0: i32) -> (i32, i32) {
    %c0_i32 = arith.constant 0 : i32
    %c0_i32_0 = arith.constant 0 : i32
    %c0_i32_1 = arith.constant 0 : i32
    return %c0_i32, %c0_i32_0 : i32, i32
  }
  func.func @transform_2(%arg0: i32) -> (i32, i32) {
    %c0_i32 = arith.constant 0 : i32
    %c0_i32_0 = arith.constant 0 : i32
    %c0_i32_1 = arith.constant 0 : i32
    return %c0_i32, %c0_i32_0 : i32, i32
  }
  func.func @transform_3(%arg0: i32) -> (i32, i32) {
    %c0_i32 = arith.constant 0 : i32
    %c0_i32_0 = arith.constant 0 : i32
    %c0_i32_1 = arith.constant 0 : i32
    return %c0_i32, %c0_i32_0 : i32, i32
  }
  func.func @transform_4(%arg0: i32) -> (i32, i32) {
    %c0_i32 = arith.constant 0 : i32
    %c0_i32_0 = arith.constant 0 : i32
    %c0_i32_1 = arith.constant 0 : i32
    return %c0_i32, %c0_i32_0 : i32, i32
  }
  func.func @transform_5(%arg0: i32) -> (i32, i32) {
    %c0_i32 = arith.constant 0 : i32
    %c0_i32_0 = arith.constant 0 : i32
    %c0_i32_1 = arith.constant 0 : i32
    return %c0_i32, %c0_i32_0 : i32, i32
  }
  func.func @transform_6(%arg0: i32) -> (i32, i32) {
    %c0_i32 = arith.constant 0 : i32
    %c0_i32_0 = arith.constant 0 : i32
    %c0_i32_1 = arith.constant 0 : i32
    return %c0_i32, %c0_i32_0 : i32, i32
  }
  func.func @transform_7(%arg0: i32) -> (i32, i32) {
    %c0_i32 = arith.constant 0 : i32
    %c0_i32_0 = arith.constant 0 : i32
    %c0_i32_1 = arith.constant 0 : i32
    return %c0_i32, %c0_i32_0 : i32, i32
  }
  func.func @transform_8(%arg0: i32) -> (i32, i32) {
    %c0_i32 = arith.constant 0 : i32
    %c0_i32_0 = arith.constant 0 : i32
    %c0_i32_1 = arith.constant 0 : i32
    return %c0_i32, %c0_i32_0 : i32, i32
  }
  func.func @transform_9(%arg0: i32) -> (i32, i32) {
    %c0_i32 = arith.constant 0 : i32
    %c0_i32_0 = arith.constant 0 : i32
    %c0_i32_1 = arith.constant 0 : i32
    return %c0_i32, %c0_i32_0 : i32, i32
  }
  func.func @transform_10(%arg0: i32) -> (i32, i32) {
    %c0_i32 = arith.constant 0 : i32
    %c0_i32_0 = arith.constant 0 : i32
    %c0_i32_1 = arith.constant 0 : i32
    return %c0_i32, %c0_i32_0 : i32, i32
  }
  func.func @transform_11(%arg0: i32) -> (i32, i32) {
    %c0_i32 = arith.constant 0 : i32
    %c0_i32_0 = arith.constant 0 : i32
    %c0_i32_1 = arith.constant 0 : i32
    return %c0_i32, %c0_i32_0 : i32, i32
  }
  func.func @transform_12(%arg0: i32) -> (i32, i32) {
    %c0_i32 = arith.constant 0 : i32
    %c0_i32_0 = arith.constant 0 : i32
    %c0_i32_1 = arith.constant 0 : i32
    return %c0_i32, %c0_i32_0 : i32, i32
  }
  func.func @transform_13(%arg0: i32) -> (i32, i32) {
    %c0_i32 = arith.constant 0 : i32
    %c0_i32_0 = arith.constant 0 : i32
    return %arg0, %c0_i32 : i32, i32
  }
}

</mosaic_0001>

<bundles_post_ra>
// kernel: resnet_forward.1
= control target key start
LH: loop header
LB: loop body
LE: loop exit
PB: predicated region body
PF: predicated region fallthrough
CT: control target
= control target key end

     0   :  { %vm59_vm0 = vcmask 1043456   ;;  %vm55_vm1 = vcmask 31744   ;;  %s751_s1 = inlined_call_operand.vmem [shape: f32[4,384], index: 1, kind: input, shape index: {}]   ;;  %s752_s2 = inlined_call_operand.vmem [shape: f32[128,128], index: 2, kind: input, shape index: {}]   ;;  %s753_s7 = inlined_call_operand.vmem [shape: f32[1,128], index: 7, kind: input, shape index: {}]   ;;  %s754_s0 = inlined_call_operand.vmem [shape: f32[8,4], index: 0, kind: input, shape index: {}]   ;;  %s755_s8 = inlined_call_operand.vmem [shape: f32[1,128], index: 8, kind: input, shape index: {}]   ;;  %s756_s3 = inlined_call_operand.vmem [shape: f32[128,128], index: 3, kind: input, shape index: {}]   ;;  %s757_s4 = inlined_call_operand.vmem [shape: f32[128,128], index: 4, kind: input, shape index: {}]   ;;  %s758_s9 = inlined_call_operand.vmem [shape: f32[1,128], index: 9, kind: input, shape index: {}]   ;;  %s759_s10 = inlined_call_operand.vmem [shape: f32[1,128], index: 10, kind: input, shape index: {}]   ;;  %s760_s5 = inlined_call_operand.vmem [shape: f32[128,128], index: 5, kind: input, shape index: {}]   ;;  %s761_s11 = inlined_call_operand.vmem [shape: f32[1,128], index: 11, kind: input, shape index: {}]   ;;  %s762_s6 = inlined_call_operand.vmem [shape: f32[128,128], index: 6, kind: input, shape index: {}]   ;;  %s763_s12 = inlined_call_operand.vmem [shape: f32[1,128], index: 12, kind: input, shape index: {}]   ;;  %s764_s13 = inlined_call_operand.vmem [shape: f32[8,128], index: 13, kind: output, shape index: {}]  }
   0x1   :  { %v45_v0 = vld [vmem:[%s751_s1] sm:$0xff]  ;;  %v152_v1 = vld [vmem:[%s752_s2 + $0x78] sm:$0xff]  ;;  %v151_v2 = vld [vmem:[%s752_s2 + $0x70] sm:$0xff] }
   0x2   :  { %49 = vst [vmem:[#allocation1] ss:$2 sm:$0xff] %v45_v0  ;;  %157 = vmatpush.msra.mxu3 %v152_v1  ;;  %v150_v3 = vld [vmem:[%s752_s2 + $0x68] sm:$0xff]  ;;  %v485_v4 = vld [vmem:[%s754_s0] sm:$0xff]  ;;  %v148_v7 = vld [vmem:[%s752_s2 + $0x58] sm:$0xff] }
   0x3   :  { %v149_v6 = vld [vmem:[%s752_s2 + $0x60] sm:$0xff]  ;;  %v147_v8 = vld [vmem:[%s752_s2 + $0x50] sm:$0xff]  ;;  %v146_v9 = vld [vmem:[%s752_s2 + $0x48] sm:$0xff] }
   0x4   :  { %158 = vmatpush.msra.mxu3 %v151_v2  ;;  %v145_v10 = vld [vmem:[%s752_s2 + $0x40] sm:$0xff]  ;;  %v144_v11 = vld [vmem:[%s752_s2 + $0x38] sm:$0xff]  ;;  %v143_v12 = vld [vmem:[%s752_s2 + $0x30] sm:$0xff] }
   0x5   :  { %v142_v13 = vld [vmem:[%s752_s2 + $0x28] sm:$0xff]  ;;  %v141_v14 = vld [vmem:[%s752_s2 + $0x20] sm:$0xff]  ;;  %v140_v15 = vld [vmem:[%s752_s2 + $0x18] sm:$0xff] }
   0x6   :  { %159 = vmatpush.msra.mxu3 %v150_v3  ;;  %v139_v16 = vld [vmem:[%s752_s2 + $0x10] sm:$0xff]  ;;  %v138_v17 = vld [vmem:[%s752_s2 + $0x8] sm:$0xff]  ;;  %v137_v18 = vld [vmem:[%s752_s2] sm:$0xff] }
   0x7   :  { %v198_v19 = vld [vmem:[%s756_s3 + $0x78] sm:$0xff]  ;;  %v197_v20 = vld [vmem:[%s756_s3 + $0x70] sm:$0xff]  ;;  %v196_v21 = vld [vmem:[%s756_s3 + $0x68] sm:$0xff] }
   0x8   :  { %160 = vmatpush.msra.mxu3 %v149_v6  ;;  %v374_v22 = vld [vmem:[%s753_s7] ss:$0 sm:$0xff]  ;;  %v194_v32 = vld [vmem:[%s756_s3 + $0x58] sm:$0xff]  ;;  %v193_v33 = vld [vmem:[%s756_s3 + $0x50] sm:$0xff] }
   0x9   :  { %v52_v5 = vld.sshfl [vmem:[#allocation1] sm:$0xff pattern:$0x75316420]  ;;  %v192_v34 = vld [vmem:[%s756_s3 + $0x48] sm:$0xff]  ;;  %v190_v36 = vld [vmem:[%s756_s3 + $0x38] sm:$0xff] }
   0xa   :  { %368 = vmatpush.msk.msra.mxu0 %vm59_vm0, %v52_v5  ;;  %161 = vmatpush.msra.mxu3 %v148_v7  ;;  %v195_v31 = vld [vmem:[%s756_s3 + $0x60] sm:$0xff]  ;;  %v189_v37 = vld [vmem:[%s756_s3 + $0x30] sm:$0xff]  ;;  %v188_v38 = vld [vmem:[%s756_s3 + $0x28] sm:$0xff] }
   0xb   :  { %369 = vmatmul.msk.f32.vlgmr.msra.gmra.mxu0 %vm55_vm1, %v485_v4  ;;  %v191_v35 = vld [vmem:[%s756_s3 + $0x40] sm:$0xff]  ;;  %v186_v40 = vld [vmem:[%s756_s3 + $0x18] sm:$0xff]  ;;  %v185_v41 = vld [vmem:[%s756_s3 + $0x10] sm:$0xff] }
   0xc   :  { %162 = vmatpush.msra.mxu3 %v147_v8  ;;  %199 = vmatpush.msrb.mxu0 %v198_v19  ;;  %v187_v39 = vld [vmem:[%s756_s3 + $0x20] sm:$0xff]  ;;  %v184_v42 = vld [vmem:[%s756_s3 + $0x8] sm:$0xff]  ;;  %v245_v45 = vld [vmem:[%s757_s4 + $0x78] sm:$0xff] }
   0xd   :  { %v53_v43 = vld.sshfl [vmem:[#allocation1 + $0x8] sm:$0xff pattern:$0x75316420]  ;;  %v183_v44 = vld [vmem:[%s756_s3] sm:$0xff]  ;;  %v244_v46 = vld [vmem:[%s757_s4 + $0x70] sm:$0xff] }
   0xe   :  { %163 = vmatpush.msra.mxu3 %v146_v9  ;;  %200 = vmatpush.msrb.mxu0 %v197_v20  ;;  %v375_v47 = vld [vmem:[%s755_s8] ss:$0 sm:$0xff]  ;;  %v243_v56 = vld [vmem:[%s757_s4 + $0x68] sm:$0xff]  ;;  %v241_v58 = vld [vmem:[%s757_s4 + $0x58] sm:$0xff] }
   0xf   :  { %370 = vmatpush.msk.msra.mxu1 %vm59_vm0, %v53_v43  ;;  %v242_v57 = vld [vmem:[%s757_s4 + $0x60] sm:$0xff]  ;;  %v240_v59 = vld [vmem:[%s757_s4 + $0x50] sm:$0xff]  ;;  %v239_v60 = vld [vmem:[%s757_s4 + $0x48] sm:$0xff] }
  0x10   :  { %164 = vmatpush.msra.mxu3 %v145_v10  ;;  %201 = vmatpush.msrb.mxu0 %v196_v21  ;;  %v238_v61 = vld [vmem:[%s757_s4 + $0x40] sm:$0xff]  ;;  %v237_v62 = vld [vmem:[%s757_s4 + $0x38] sm:$0xff]  ;;  %v236_v63 = vld [vmem:[%s757_s4 + $0x30] sm:$0xff] }
  0x11   :  { %371 = vmatmul.msk.f32.vlgmr.msra.gmra.mxu1 %vm55_vm1, %v485_v4  ;;  %v235_v0 = vld [vmem:[%s757_s4 + $0x28] sm:$0xff]  ;;  %v234_v1 = vld [vmem:[%s757_s4 + $0x20] sm:$0xff]  ;;  %v233_v2 = vld [vmem:[%s757_s4 + $0x18] sm:$0xff] }
  0x12   :  { %165 = vmatpush.msra.mxu3 %v144_v11  ;;  %202 = vmatpush.msrb.mxu0 %v195_v31  ;;  %v232_v3 = vld [vmem:[%s757_s4 + $0x10] sm:$0xff]  ;;  %v231_v5 = vld [vmem:[%s757_s4 + $0x8] sm:$0xff]  ;;  %v230_v6 = vld [vmem:[%s757_s4] sm:$0xff] }
  0x13   :  { %250 = vmatpush.msrb.mxu1 %v245_v45  ;;  %v46_v7 = vld [vmem:[%s751_s1 + $0x8] sm:$0xf]  ;;  %v376_v9 = vld [vmem:[%s758_s9] ss:$0 sm:$0xff]  ;;  %v279_v31 = vld [vmem:[%s760_s5 + $0x18] sm:$0xff] }
  0x14   :  { %166 = vmatpush.msra.mxu3 %v143_v12  ;;  %203 = vmatpush.msrb.mxu0 %v194_v32  ;;  %51 = vst [vmem:[#allocation1 + $0x10] ss:$2 sm:$0xff] %v46_v7  ;;  %v291_v12 = vld [vmem:[%s760_s5 + $0x78] sm:$0xff]  ;;  %v278_v32 = vld [vmem:[%s760_s5 + $0x10] sm:$0xff] }
  0x15   :  { %251 = vmatpush.msrb.mxu1 %v244_v46  ;;  %v336_v46 = vld [vmem:[%s762_s6 + $0x68] sm:$0xff] }
  0x16   :  { %167 = vmatpush.msra.mxu3 %v142_v13  ;;  %204 = vmatpush.msrb.mxu0 %v193_v33  ;;  %v277_v33 = vld [vmem:[%s760_s5 + $0x8] sm:$0xff] }
  0x17   :  { %252 = vmatpush.msrb.mxu1 %v243_v56  ;;  %v326_v56 = vld [vmem:[%s762_s6 + $0x18] sm:$0xff] }
  0x18   :  { %168 = vmatpush.msra.mxu3 %v141_v14  ;;  %205 = vmatpush.msrb.mxu0 %v192_v34  ;;  %v276_v34 = vld [vmem:[%s760_s5] sm:$0xff] }
  0x19   :  { %253 = vmatpush.msrb.mxu1 %v242_v57  ;;  %v325_v57 = vld [vmem:[%s762_s6 + $0x10] sm:$0xff] }
  0x1a   :  { %169 = vmatpush.msra.mxu3 %v140_v15  ;;  %206 = vmatpush.msrb.mxu0 %v191_v35  ;;  %v290_v15 = vld [vmem:[%s760_s5 + $0x70] sm:$0xff]  ;;  %v338_v35 = vld [vmem:[%s762_s6 + $0x78] sm:$0xff] }
  0x1b   :  { %254 = vmatpush.msrb.mxu1 %v241_v58  ;;  %v54_v14 = vld.sshfl [vmem:[#allocation1 + $0x10] sm:$0xff pattern:$0x75316420]  ;;  %v324_v58 = vld [vmem:[%s762_s6 + $0x8] sm:$0xff] }
  0x1c   :  { %170 = vmatpush.msra.mxu3 %v139_v16  ;;  %207 = vmatpush.msrb.mxu0 %v190_v36  ;;  %v337_v36 = vld [vmem:[%s762_s6 + $0x70] sm:$0xff] }
  0x1d   :  { %255 = vmatpush.msrb.mxu1 %v240_v59  ;;  %372 = vmatpush.msk.msra.mxu2 %vm59_vm0, %v54_v14 }
  0x1e   :  { %171 = vmatpush.msra.mxu3 %v138_v17  ;;  %208 = vmatpush.msrb.mxu0 %v189_v37  ;;  %v289_v17 = vld [vmem:[%s760_s5 + $0x68] sm:$0xff]  ;;  %v377_v37 = vld [vmem:[%s759_s10] ss:$0 sm:$0xff] }
  0x1f   :  { %256 = vmatpush.msrb.mxu1 %v239_v60  ;;  %292 = vmatpush.msrb.mxu2 %v291_v12  ;;  %v323_v60 = vld [vmem:[%s762_s6] sm:$0xff] }
  0x20   :  { %172 = vmatpush.msra.mxu3 %v137_v18  ;;  %209 = vmatpush.msrb.mxu0 %v188_v38 }
  0x21   :  { %257 = vmatpush.msrb.mxu1 %v238_v61  ;;  %373 = vmatmul.msk.f32.vlgmr.msra.gmra.mxu2 %vm55_vm1, %v485_v4  ;;  %v286_v4 = vld [vmem:[%s760_s5 + $0x50] sm:$0xff]  ;;  %v378_v61 = vld [vmem:[%s761_s11] ss:$0 sm:$0xff] }
  0x22   :  { %210 = vmatpush.msrb.mxu0 %v187_v39  ;;  %293 = vmatpush.msrb.mxu2 %v290_v15 }
  0x23   :  { %258 = vmatpush.msrb.mxu1 %v237_v62  ;;  %343 = vmatpush.msrb.mxu3 %v338_v35 }
  0x24   :  { %211 = vmatpush.msrb.mxu0 %v186_v40  ;;  %294 = vmatpush.msrb.mxu2 %v289_v17 }
  0x25   :  { %259 = vmatpush.msrb.mxu1 %v236_v63  ;;  %344 = vmatpush.msrb.mxu3 %v337_v36 }
  0x26   :  { %212 = vmatpush.msrb.mxu0 %v185_v41 }
  0x27   :  { %260 = vmatpush.msrb.mxu1 %v235_v0  ;;  %345 = vmatpush.msrb.mxu3 %v336_v46 }
  0x28   :  { %213 = vmatpush.msrb.mxu0 %v184_v42 }
  0x29   :  { %261 = vmatpush.msrb.mxu1 %v234_v1 }
  0x2a   :  { %214 = vmatpush.msrb.mxu0 %v183_v44 }
  0x2b   :  { %262 = vmatpush.msrb.mxu1 %v233_v2 }
  0x2d   :  { %263 = vmatpush.msrb.mxu1 %v232_v3 }
  0x2f   :  { %264 = vmatpush.msrb.mxu1 %v231_v5 }
  0x31   :  { %265 = vmatpush.msrb.mxu1 %v230_v6 }
  0x88   :  { %v83_v23 = vpop.f32.mrf.mxu0 }
  0x89   :  { %v130_v24 = vadd.f32 %v374_v22, %v83_v23  ;;  %v288_v23 = vld [vmem:[%s760_s5 + $0x60] sm:$0xff] }
  0x8a   :  { %295 = vmatpush.msrb.mxu2 %v288_v23 }
  0x8b   :  { %v131_v25 = vsub.f32 0.0, %v130_v24 }
  0x8d   :  { %v132_v26 = vmul.f32 1.442695, %v131_v25  ;;  %v285_v25 = vld [vmem:[%s760_s5 + $0x48] sm:$0xff] }
  0x8e   :  { %v103_v8 = vpop.f32.mrf.mxu1 }
  0x8f   :  { %380 = vpow2.f32 %v132_v26  ;;  %v284_v26 = vld [vmem:[%s760_s5 + $0x40] sm:$0xff] }
  0x95   :  { %v381_v27 = vpop.eup %380 }
  0x96   :  { %v134_v28 = vadd.f32 1.0, %v381_v27  ;;  %v283_v27 = vld [vmem:[%s760_s5 + $0x38] sm:$0xff] }
  0x98   :  { %382 = vrcp.f32 %v134_v28  ;;  %v282_v28 = vld [vmem:[%s760_s5 + $0x30] sm:$0xff] }
  0x9e   :  { %v383_v29 = vpop.eup %382 }
  0x9f   :  { %v136_v30 = vmul.f32 %v383_v29, %v130_v24  ;;  %v287_v24 = vld [vmem:[%s760_s5 + $0x58] sm:$0xff]  ;;  %v281_v29 = vld [vmem:[%s760_s5 + $0x28] sm:$0xff] }
  0xa0   :  { %296 = vmatpush.msrb.mxu2 %v287_v24 }
  0xa1   :  { %173 = vmatmul.f32.vlgmr.msra.gmra.mxu3 %v136_v30  ;;  %v280_v30 = vld [vmem:[%s760_s5 + $0x20] sm:$0xff] }
  0xa2   :  { %297 = vmatpush.msrb.mxu2 %v286_v4 }
  0xa4   :  { %298 = vmatpush.msrb.mxu2 %v285_v25  ;;  %v123_v59 = vpop.f32.mrf.mxu2 }
  0xa6   :  { %299 = vmatpush.msrb.mxu2 %v284_v26 }
  0xa8   :  { %300 = vmatpush.msrb.mxu2 %v283_v27 }
  0xaa   :  { %301 = vmatpush.msrb.mxu2 %v282_v28 }
  0xac   :  { %302 = vmatpush.msrb.mxu2 %v281_v29 }
  0xae   :  { %303 = vmatpush.msrb.mxu2 %v280_v30 }
  0xb0   :  { %304 = vmatpush.msrb.mxu2 %v279_v31 }
  0xb2   :  { %305 = vmatpush.msrb.mxu2 %v278_v32 }
  0xb4   :  { %306 = vmatpush.msrb.mxu2 %v277_v33 }
  0xb6   :  { %307 = vmatpush.msrb.mxu2 %v276_v34 }
 0x124   :  { %v174_v48 = vpop.f32.mrf.mxu3 }
 0x125   :  { %v175_v49 = vadd.f32 %v375_v47, %v174_v48  ;;  %v335_v47 = vld [vmem:[%s762_s6 + $0x60] sm:$0xff]  ;;  %v334_v48 = vld [vmem:[%s762_s6 + $0x58] sm:$0xff] }
 0x126   :  { %346 = vmatpush.msrb.mxu3 %v335_v47 }
 0x127   :  { %v177_v50 = vsub.f32 0.0, %v175_v49 }
 0x128   :  { %347 = vmatpush.msrb.mxu3 %v334_v48 }
 0x129   :  { %v178_v51 = vmul.f32 1.442695, %v177_v50  ;;  %v332_v50 = vld [vmem:[%s762_s6 + $0x48] sm:$0xff] }
 0x12b   :  { %384 = vpow2.f32 %v178_v51  ;;  %v331_v51 = vld [vmem:[%s762_s6 + $0x40] sm:$0xff] }
 0x131   :  { %v385_v52 = vpop.eup %384 }
 0x132   :  { %v180_v53 = vadd.f32 1.0, %v385_v52  ;;  %v330_v52 = vld [vmem:[%s762_s6 + $0x38] sm:$0xff] }
 0x134   :  { %386 = vrcp.f32 %v180_v53  ;;  %v329_v53 = vld [vmem:[%s762_s6 + $0x30] sm:$0xff] }
 0x13a   :  { %v387_v54 = vpop.eup %386 }
 0x13b   :  { %v182_v55 = vmul.f32 %v387_v54, %v175_v49  ;;  %v333_v49 = vld [vmem:[%s762_s6 + $0x50] sm:$0xff]  ;;  %v328_v54 = vld [vmem:[%s762_s6 + $0x28] sm:$0xff] }
 0x13c   :  { %348 = vmatpush.msrb.mxu3 %v333_v49 }
 0x13d   :  { %215 = vmatmul.f32.vlgmr.msrb.gmra.mxu0 %v182_v55  ;;  %v327_v55 = vld [vmem:[%s762_s6 + $0x20] sm:$0xff] }
 0x13e   :  { %349 = vmatpush.msrb.mxu3 %v332_v50 }
 0x140   :  { %350 = vmatpush.msrb.mxu3 %v331_v51 }
 0x142   :  { %351 = vmatpush.msrb.mxu3 %v330_v52 }
 0x144   :  { %352 = vmatpush.msrb.mxu3 %v329_v53 }
 0x146   :  { %353 = vmatpush.msrb.mxu3 %v328_v54 }
 0x148   :  { %354 = vmatpush.msrb.mxu3 %v327_v55 }
 0x14a   :  { %355 = vmatpush.msrb.mxu3 %v326_v56 }
 0x14c   :  { %356 = vmatpush.msrb.mxu3 %v325_v57 }
 0x14e   :  { %357 = vmatpush.msrb.mxu3 %v324_v58 }
 0x150   :  { %358 = vmatpush.msrb.mxu3 %v323_v60 }
 0x1ba   :  { %v216_v10 = vpop.f32.mrf.mxu0 }
 0x1bb   :  { %v217_v11 = vadd.f32 %v216_v10, %v103_v8  ;;  %v379_v8 = vld [vmem:[%s763_s12] ss:$0 sm:$0xff] }
 0x1bd   :  { %v223_v13 = vadd.f32 %v376_v9, %v217_v11 }
 0x1bf   :  { %v224_v16 = vsub.f32 0.0, %v223_v13 }
 0x1c1   :  { %v225_v18 = vmul.f32 1.442695, %v224_v16 }
 0x1c3   :  { %388 = vpow2.f32 %v225_v18 }
 0x1c9   :  { %v389_v19 = vpop.eup %388 }
 0x1ca   :  { %v227_v20 = vadd.f32 1.0, %v389_v19 }
 0x1cc   :  { %390 = vrcp.f32 %v227_v20 }
 0x1d2   :  { %v391_v21 = vpop.eup %390 }
 0x1d3   :  { %v229_v22 = vmul.f32 %v391_v21, %v223_v13 }
 0x1d5   :  { %266 = vmatmul.f32.vlgmr.msrb.gmra.mxu1 %v229_v22 }
 0x252   :  { %v267_v38 = vpop.f32.mrf.mxu1 }
 0x253   :  { %v268_v39 = vadd.f32 %v377_v37, %v267_v38 }
 0x255   :  { %v270_v40 = vsub.f32 0.0, %v268_v39 }
 0x257   :  { %v271_v41 = vmul.f32 1.442695, %v270_v40 }
 0x259   :  { %392 = vpow2.f32 %v271_v41 }
 0x25f   :  { %v393_v42 = vpop.eup %392 }
 0x260   :  { %v273_v43 = vadd.f32 1.0, %v393_v42 }
 0x262   :  { %394 = vrcp.f32 %v273_v43 }
 0x268   :  { %v395_v44 = vpop.eup %394 }
 0x269   :  { %v275_v45 = vmul.f32 %v395_v44, %v268_v39 }
 0x26b   :  { %308 = vmatmul.f32.vlgmr.msrb.gmra.mxu2 %v275_v45 }
 0x2ee   :  { %v309_v62 = vpop.f32.mrf.mxu2 }
 0x2ef   :  { %v310_v63 = vadd.f32 %v309_v62, %v123_v59 }
 0x2f1   :  { %v316_v0 = vadd.f32 %v378_v61, %v310_v63 }
 0x2f3   :  { %v317_v1 = vsub.f32 0.0, %v316_v0 }
 0x2f5   :  { %v318_v2 = vmul.f32 1.442695, %v317_v1 }
 0x2f7   :  { %396 = vpow2.f32 %v318_v2 }
 0x2fd   :  { %v397_v3 = vpop.eup %396 }
 0x2fe   :  { %v320_v5 = vadd.f32 1.0, %v397_v3 }
 0x300   :  { %398 = vrcp.f32 %v320_v5 }
 0x306   :  { %v399_v6 = vpop.eup %398 }
 0x307   :  { %v322_v7 = vmul.f32 %v399_v6, %v316_v0 }
 0x309   :  { %359 = vmatmul.f32.vlgmr.msrb.gmra.mxu3 %v322_v7 }
 0x38c   :  { %v360_v9 = vpop.f32.mrf.mxu3 }
 0x38d   :  { %v361_v10 = vadd.f32 %v379_v8, %v360_v9 }
 0x38f   :  { %363 = vst [vmem:[%s764_s13] sm:$0xff] %v361_v10 }

</bundles_post_ra>
